<compile_context>
chip_gen: v7x
topology: tpu7x:2x2x1
jax: 0.10.0
libtpu: 0.0.40
codegen_flags: <defaults>
</compile_context>

<pallas_src>
import jax
import jax.numpy as jnp
from jax.experimental import pallas as pl
from jax.experimental.pallas import tpu as pltpu

_LANES = 128
_MAX_TILE_ROWS = 1024   # (1024,128) f32 tile = 512 KiB; 2 in x 2 buf + 2 acc ~= 3 MiB VMEM
_NUM_CORES = 2          # v7x megacore split; sequential (and correct) on 1-TC chips
_SMOOTH = 1e-4


def _make_kernel(tile_rows, rows, cpc, needs_mask):
    def kernel(yt_ref, yp_ref, out_prod_ref, out_add_ref,
               acc_prod_ref, acc_add_ref):
        c = pl.program_id(0)   # core (parallel) axis
        j = pl.program_id(1)   # chunk (reduction / arbitrary) axis

        @pl.when(j == 0)
        def _():
            acc_prod_ref[...] = jnp.zeros_like(acc_prod_ref)
            acc_add_ref[...] = jnp.zeros_like(acc_add_ref)

        yt = yt_ref[...].astype(jnp.float32)
        yp = yp_ref[...].astype(jnp.float32)

        if needs_mask:
            # Mask rows past the end of the (rows,128) slab: covers the partial last
            # chunk and any fully-out-of-range "phantom" chunk assigned to a core.
            row0 = (c * cpc + j) * tile_rows
            row_ids = jax.lax.broadcasted_iota(jnp.int32, (tile_rows, _LANES), 0)
            valid = (row_ids + row0) < rows
            yt = jnp.where(valid, yt, 0.0)
            yp = jnp.where(valid, yp, 0.0)

        acc_prod_ref[...] += yt * yp    # -> sum(y_true * y_pred)
        acc_add_ref[...] += yt + yp     # -> sum(y_true) + sum(y_pred)

        @pl.when(j == cpc - 1)
        def _():
            # Single cross-row reduce per core, deferred to the last step.
            out_prod_ref[0] = jnp.sum(acc_prod_ref[...], axis=0, keepdims=True)
            out_add_ref[0] = jnp.sum(acc_add_ref[...], axis=0, keepdims=True)

    return kernel


def dice_coefficient_rec(y_true, y_pred):
    """2 * sum(y_true*y_pred) / (sum(y_true) + sum(y_pred) + 1e-4), shape (1,)."""
    assert y_true.shape == y_pred.shape
    n = y_true.size
    if n == 0:
        return jnp.zeros((1,), jnp.float32)

    yt = jnp.ravel(y_true)
    yp = jnp.ravel(y_pred)

    # View the flat buffers as a lane-dense (rows, 128) slab. Only pad (an HBM copy)
    # when the flat size isn't already lane aligned; dtype is kept native and cast
    # inside the kernel (no wrapper-side upcast copy).
    padded = pl.cdiv(n, _LANES) * _LANES
    pad = padded - n
    if pad:
        yt = jnp.pad(yt, (0, pad))
        yp = jnp.pad(yp, (0, pad))
    rows = padded // _LANES
    yt2 = yt.reshape(rows, _LANES)
    yp2 = yp.reshape(rows, _LANES)

    tile_rows = min(_MAX_TILE_ROWS, rows)       # == rows (full dim) for small inputs
    total_chunks = pl.cdiv(rows, tile_rows)
    num_cores = _NUM_CORES if total_chunks >= 2 else 1
    cpc = pl.cdiv(total_chunks, num_cores)      # chunks per core
    has_phantom = (num_cores * cpc != total_chunks)
    needs_mask = (num_cores * cpc * tile_rows != rows)

    def in_map(c, j):
        chunk = c * cpc + j
        if has_phantom:
            chunk = jnp.minimum(chunk, total_chunks - 1)   # keep the DMA in bounds
        return (chunk, 0)

    def out_map(c, j):
        return (c, 0, 0)

    kernel = _make_kernel(tile_rows, rows, cpc, needs_mask)

    bytes_in = n * (jnp.dtype(y_true.dtype).itemsize + jnp.dtype(y_pred.dtype).itemsize)
    cost = pl.CostEstimate(flops=3 * n, transcendentals=0,
                           bytes_accessed=bytes_in + 2 * num_cores * _LANES * 4)

    out_prod, out_add = pl.pallas_call(
        kernel,
        out_shape=(jax.ShapeDtypeStruct((num_cores, 1, _LANES), jnp.float32),
                   jax.ShapeDtypeStruct((num_cores, 1, _LANES), jnp.float32)),
        grid_spec=pltpu.PrefetchScalarGridSpec(
            num_scalar_prefetch=0,
            grid=(num_cores, cpc),
            in_specs=[pl.BlockSpec((tile_rows, _LANES), in_map),
                      pl.BlockSpec((tile_rows, _LANES), in_map)],
            out_specs=[pl.BlockSpec((1, 1, _LANES), out_map),
                       pl.BlockSpec((1, 1, _LANES), out_map)],
            scratch_shapes=[pltpu.VMEM((tile_rows, _LANES), jnp.float32),
                            pltpu.VMEM((tile_rows, _LANES), jnp.float32)],
        ),
        compiler_params=pltpu.CompilerParams(
            dimension_semantics=("parallel", "arbitrary"),
        ),
        cost_estimate=cost,
    )(yt2, yp2)

    num = 2.0 * jnp.sum(out_prod)
    den = jnp.sum(out_add) + jnp.float32(_SMOOTH)
    return (num / den).reshape(1)


def _reference(y_true, y_pred):
    return (2.0 * jnp.sum(y_true * y_pred)
            / (jnp.sum(y_true) + jnp.sum(y_pred) + jnp.float32(_SMOOTH))).reshape(1)


if __name__ == "__main__":
    key = jax.random.PRNGKey(0)

    shapes = [
        (2, 4, 16, 16),    # primary small NCHW case: lane-aligned, single tile
        (3, 5, 7, 11),     # unaligned flat size -> lane-padding path
        (2, 16, 96, 96),   # multi-chunk: 2-core split + tail mask + phantom chunk
    ]

    for shape in shapes:
        key, k1, k2 = jax.random.split(key, 3)
        y_true = (jax.random.uniform(k1, shape, dtype=jnp.float32) > 0.5
                  ).astype(jnp.float32)
        y_pred = jax.random.uniform(k2, shape, dtype=jnp.float32)

        out = dice_coefficient_rec(y_true, y_pred)
        jax.block_until_ready(out)

        ref = _reference(y_true, y_pred)
        assert out.shape == (1,)
        assert jnp.allclose(out, ref, rtol=1e-4, atol=1e-5), (shape, out, ref)

    print("KERNEL_OK")
</pallas_src>

<mosaic_0001>
module attributes {stable_mosaic.version = 11 : i64} {
  func.func @kernel(%arg0: i32, %arg1: i32, %arg2: memref<16x128xf32, #tpu.memory_space<vmem>>, %arg3: memref<16x128xf32, #tpu.memory_space<vmem>>, %arg4: memref<1x1x128xf32, #tpu.memory_space<vmem>>, %arg5: memref<1x1x128xf32, #tpu.memory_space<vmem>>, %arg6: memref<16x128xf32, #tpu.memory_space<vmem>>, %arg7: memref<16x128xf32, #tpu.memory_space<vmem>>) attributes {dimension_semantics = [#tpu.dimension_semantics<parallel>, #tpu.dimension_semantics<arbitrary>], iteration_bounds = array<i64: 1, 1>, scalar_prefetch = 0 : i64, scratch_operands = 2 : i64, tpu.core_type = #tpu.core_type<tc>, window_params = [{transform_indices = @transform_0, window_bounds = array<i64: 16, 128>}, {transform_indices = @transform_1, window_bounds = array<i64: 16, 128>}, {transform_indices = @transform_2, window_bounds = array<i64: 1, 1, 128>}, {transform_indices = @transform_3, window_bounds = array<i64: 1, 1, 128>}]} {
    %c0_i32 = arith.constant 0 : i32
    %0 = arith.cmpi eq, %arg1, %c0_i32 : i32
    %1 = arith.extui %0 : i1 to i32
    %c0_i32_0 = arith.constant 0 : i32
    %2 = arith.cmpi ne, %1, %c0_i32_0 : i32
    scf.if %2 {
      %cst = arith.constant 0.000000e+00 : f32
      %16 = vector.broadcast %cst : f32 to vector<16x128xf32>
      %c0_14 = arith.constant 0 : index
      %c0_15 = arith.constant 0 : index
      %17 = vector.load %arg6[%c0_14, %c0_15] : memref<16x128xf32, #tpu.memory_space<vmem>>, vector<16x128xf32>
      tpu.vector_store %arg6[%c0_14, %c0_15], %16 {strides = array<i32>} : memref<16x128xf32, #tpu.memory_space<vmem>>, vector<16x128xf32>,
      %cst_16 = arith.constant 0.000000e+00 : f32
      %18 = vector.broadcast %cst_16 : f32 to vector<16x128xf32>
      %c0_17 = arith.constant 0 : index
      %c0_18 = arith.constant 0 : index
      %19 = vector.load %arg7[%c0_17, %c0_18] : memref<16x128xf32, #tpu.memory_space<vmem>>, vector<16x128xf32>
      tpu.vector_store %arg7[%c0_17, %c0_18], %18 {strides = array<i32>} : memref<16x128xf32, #tpu.memory_space<vmem>>, vector<16x128xf32>,
    } else {
    }
    %c0 = arith.constant 0 : index
    %c0_1 = arith.constant 0 : index
    %3 = vector.load %arg2[%c0, %c0_1] : memref<16x128xf32, #tpu.memory_space<vmem>>, vector<16x128xf32>
    %c0_2 = arith.constant 0 : index
    %c0_3 = arith.constant 0 : index
    %4 = vector.load %arg3[%c0_2, %c0_3] : memref<16x128xf32, #tpu.memory_space<vmem>>, vector<16x128xf32>
    %c0_4 = arith.constant 0 : index
    %c0_5 = arith.constant 0 : index
    %5 = vector.load %arg6[%c0_4, %c0_5] : memref<16x128xf32, #tpu.memory_space<vmem>>, vector<16x128xf32>
    %6 = arith.mulf %3, %4 : vector<16x128xf32>
    %7 = arith.addf %5, %6 : vector<16x128xf32>
    %c0_6 = arith.constant 0 : index
    %c0_7 = arith.constant 0 : index
    %8 = vector.load %arg6[%c0_6, %c0_7] : memref<16x128xf32, #tpu.memory_space<vmem>>, vector<16x128xf32>
    tpu.vector_store %arg6[%c0_6, %c0_7], %7 {strides = array<i32>} : memref<16x128xf32, #tpu.memory_space<vmem>>, vector<16x128xf32>,
    %c0_8 = arith.constant 0 : index
    %c0_9 = arith.constant 0 : index
    %9 = vector.load %arg7[%c0_8, %c0_9] : memref<16x128xf32, #tpu.memory_space<vmem>>, vector<16x128xf32>
    %10 = arith.addf %3, %4 : vector<16x128xf32>
    %11 = arith.addf %9, %10 : vector<16x128xf32>
    %c0_10 = arith.constant 0 : index
    %c0_11 = arith.constant 0 : index
    %12 = vector.load %arg7[%c0_10, %c0_11] : memref<16x128xf32, #tpu.memory_space<vmem>>, vector<16x128xf32>
    tpu.vector_store %arg7[%c0_10, %c0_11], %11 {strides = array<i32>} : memref<16x128xf32, #tpu.memory_space<vmem>>, vector<16x128xf32>,
    %c0_i32_12 = arith.constant 0 : i32
    %13 = arith.cmpi eq, %arg1, %c0_i32_12 : i32
    %14 = arith.extui %13 : i1 to i32
    %c0_i32_13 = arith.constant 0 : i32
    %15 = arith.cmpi ne, %14, %c0_i32_13 : i32
    scf.if %15 {
      %c0_14 = arith.constant 0 : index
      %c0_15 = arith.constant 0 : index
      %16 = vector.load %arg6[%c0_14, %c0_15] : memref<16x128xf32, #tpu.memory_space<vmem>>, vector<16x128xf32>
      %cst = arith.constant dense<0.000000e+00> : vector<128xf32>
      %17 = vector.multi_reduction <add>, %16, %cst [0] : vector<16x128xf32> to vector<128xf32>
      %18 = vector.shape_cast %17 : vector<128xf32> to vector<1x128xf32>
      %c0_16 = arith.constant 0 : index
      %c0_17 = arith.constant 0 : index
      %c0_18 = arith.constant 0 : index
      %19 = vector.load %arg4[%c0_16, %c0_17, %c0_18] : memref<1x1x128xf32, #tpu.memory_space<vmem>>, vector<1x1x128xf32>
      %20 = vector.shape_cast %19 : vector<1x1x128xf32> to vector<1x128xf32>
      %21 = vector.shape_cast %18 : vector<1x128xf32> to vector<1x1x128xf32>
      tpu.vector_store %arg4[%c0_16, %c0_17, %c0_18], %21 {strides = array<i32>} : memref<1x1x128xf32, #tpu.memory_space<vmem>>, vector<1x1x128xf32>,
      %c0_19 = arith.constant 0 : index
      %c0_20 = arith.constant 0 : index
      %22 = vector.load %arg7[%c0_19, %c0_20] : memref<16x128xf32, #tpu.memory_space<vmem>>, vector<16x128xf32>
      %cst_21 = arith.constant dense<0.000000e+00> : vector<128xf32>
      %23 = vector.multi_reduction <add>, %22, %cst_21 [0] : vector<16x128xf32> to vector<128xf32>
      %24 = vector.shape_cast %23 : vector<128xf32> to vector<1x128xf32>
      %c0_22 = arith.constant 0 : index
      %c0_23 = arith.constant 0 : index
      %c0_24 = arith.constant 0 : index
      %25 = vector.load %arg5[%c0_22, %c0_23, %c0_24] : memref<1x1x128xf32, #tpu.memory_space<vmem>>, vector<1x1x128xf32>
      %26 = vector.shape_cast %25 : vector<1x1x128xf32> to vector<1x128xf32>
      %27 = vector.shape_cast %24 : vector<1x128xf32> to vector<1x1x128xf32>
      tpu.vector_store %arg5[%c0_22, %c0_23, %c0_24], %27 {strides = array<i32>} : memref<1x1x128xf32, #tpu.memory_space<vmem>>, vector<1x1x128xf32>,
    } else {
    }
    return
  }
  func.func @transform_0(%arg0: i32, %arg1: i32) -> (i32, i32) {
    %c1_i32 = arith.constant 1 : i32
    %0 = arith.muli %arg0, %c1_i32 : i32
    %1 = arith.addi %0, %arg1 : i32
    %c0_i32 = arith.constant 0 : i32
    %c0_i32_0 = arith.constant 0 : i32
    return %1, %c0_i32 : i32, i32
  }
  func.func @transform_1(%arg0: i32, %arg1: i32) -> (i32, i32) {
    %c1_i32 = arith.constant 1 : i32
    %0 = arith.muli %arg0, %c1_i32 : i32
    %1 = arith.addi %0, %arg1 : i32
    %c0_i32 = arith.constant 0 : i32
    %c0_i32_0 = arith.constant 0 : i32
    return %1, %c0_i32 : i32, i32
  }
  func.func @transform_2(%arg0: i32, %arg1: i32) -> (i32, i32, i32) {
    %c0_i32 = arith.constant 0 : i32
    %c0_i32_0 = arith.constant 0 : i32
    %c0_i32_1 = arith.constant 0 : i32
    return %arg0, %c0_i32, %c0_i32_0 : i32, i32, i32
  }
  func.func @transform_3(%arg0: i32, %arg1: i32) -> (i32, i32, i32) {
    %c0_i32 = arith.constant 0 : i32
    %c0_i32_0 = arith.constant 0 : i32
    %c0_i32_1 = arith.constant 0 : i32
    return %arg0, %c0_i32, %c0_i32_0 : i32, i32, i32
  }
}

</mosaic_0001>

<bundles_post_ra>
// kernel: tpu_custom_call.1
= control target key start
LH: loop header
LB: loop body
LE: loop exit
PB: predicated region body
PF: predicated region fallthrough
CT: control target
= control target key end

     0   :  { %9 = vsyncpa [#allocation5], 0  ;;  %s320_s0 = inlined_call_operand.hbm [shape: f32[16,128], index: 0, kind: input, shape index: {}]   ;;  %s321_s1 = inlined_call_operand.hbm [shape: f32[16,128], index: 1, kind: input, shape index: {}]   ;;  %s322_s2 = inlined_call_operand.hbm [shape: f32[1,1,128], index: 2, kind: output, shape index: {0}]   ;;  %s323_s3 = inlined_call_operand.hbm [shape: f32[1,1,128], index: 3, kind: output, shape index: {1}]  }
   0x1   :  { %10 = vsyncpa [#allocation8], 0 }
   0x2   :  { %11 = vsyncpa [#allocation6], 0 }
   0x3   :  { %12 = vsyncpa [#allocation11], 0  ;;  %s238_s12 = smov [#allocation4]   ;;  %s142_s16 = scalar_lea.hbm %s320_s0, 256 }
   0x4   :  { %s22_s13 = sshll.u32 %s238_s12, 4  ;;  %p143_p0 = scmp.ne.s32.totalorder %s320_s0, %s142_s16  ;;  %s23_s13 = int_to_ptr.vmem [resolvable:$true] %s22_s13 }
   0x5   :  { %p146_p1 = scmp.lt.u32.totalorder %s142_s16, %s320_s0 }
   0x7   :  { %p148_p2 = pnand %p146_p1, %p143_p0 }
   0x9   :  { %151 = shalt.err (!%p148_p2)
}
   0xa   :  { %s152_s21 = scalar_lea.vmem %s23_s13, 256  ;;  %p157_p4 = scmp.lt.s32.totalorder %s23_s13, %s23_s13 }
   0xb   :  { %p153_p3 = scmp.ne.s32.totalorder %s23_s13, %s152_s21  ;;  %p158_p5 = scmp.lt.s32.totalorder %s152_s21, %s152_s21 }
   0xd   :  { %p159_p6 = por %p158_p5, %p157_p4 }
   0xf   :  { %p160_p7 = pnand %p159_p6, %p153_p3 }
  0x11   :  { %163 = shalt.err (!%p160_p7)
}
  0x12   :  { %s239_s22 = smov 128   ;;  %s240_s23 = smov 8  }
  0x13   :  { %28 = dma.hbm_to_vmem [thread:$0]  %s320_s0, 256, %s23_s13, [#allocation5], %s239_s22, %s239_s22, %s240_s23  }
  0x14   :  { %s241_s26 = smov [#allocation7]   ;;  %s164_s30 = scalar_lea.hbm %s321_s1, 256 }
  0x15   :  { %s38_s27 = sshll.u32 %s241_s26, 4  ;;  %p165_p8 = scmp.ne.s32.totalorder %s321_s1, %s164_s30  ;;  %s39_s27 = int_to_ptr.vmem [resolvable:$true] %s38_s27 }
  0x16   :  { %p168_p9 = scmp.lt.u32.totalorder %s164_s30, %s321_s1 }
  0x18   :  { %p170_p10 = pnand %p168_p9, %p165_p8 }
  0x1a   :  { %173 = shalt.err (!%p170_p10)
}
  0x1b   :  { %s174_s8 = scalar_lea.vmem %s39_s27, 256  ;;  %p179_p12 = scmp.lt.s32.totalorder %s39_s27, %s39_s27 }
  0x1c   :  { %p175_p11 = scmp.ne.s32.totalorder %s39_s27, %s174_s8  ;;  %p180_p13 = scmp.lt.s32.totalorder %s174_s8, %s174_s8 }
  0x1e   :  { %p181_p0 = por %p180_p13, %p179_p12 }
  0x20   :  { %p182_p1 = pnand %p181_p0, %p175_p11 }
  0x22   :  { %185 = shalt.err (!%p182_p1)
}
  0x23   :  { %44 = dma.hbm_to_vmem [thread:$0]  %s321_s1, 256, %s39_s27, [#allocation8], %s239_s22, %s239_s22, %s240_s23  }
  0x24   :  { %230 = dma.done.wait [#allocation5], 256  }
  0x25   :  { %231 = vsyncadd [#allocation5], 4294967040 }
  0x26   :  { %232 = dma.done.wait [#allocation8], 256  }
  0x27   :  { %233 = vsyncadd [#allocation8], 4294967040  ;;  %v63_v0 = vld [vmem:[#allocation4] sm:$0xff]  ;;  %v64_v1 = vld [vmem:[#allocation4 + $0x8] sm:$0xff]  ;;  %s242_s1 = smov [#allocation9]   ;;  %s243_s11 = smov [#allocation10]  }
  0x28   :  { %v65_v2 = vld [vmem:[#allocation7] sm:$0xff]  ;;  %v66_v3 = vld [vmem:[#allocation7 + $0x8] sm:$0xff]  ;;  %s112_s10 = sshll.u32 %s242_s1, 4  ;;  %s122_s12 = sshll.u32 %s243_s11, 4  ;;  %s113_s10 = int_to_ptr.vmem [resolvable:$true] %s112_s10  ;;  %s288_s12 = int_to_ptr.vmem [resolvable:$true] %s122_s12 }
  0x29   :  { %v69_v4 = vmul.f32 %v65_v2, %v63_v0  ;;  %v77_v5 = vadd.f32 %v65_v2, %v63_v0  ;;  %v70_v6 = vmul.f32 %v66_v3, %v64_v1  ;;  %v78_v7 = vadd.f32 %v66_v3, %v64_v1  ;;  %s186_s13 = scalar_lea.vmem %s113_s10, 16  ;;  %s190_s14 = scalar_lea.vmem %s113_s10, 32 }
  0x2a   :  { %p187_p2 = scmp.ne.s32.totalorder %s113_s10, %s186_s13  ;;  %p191_p3 = scmp.lt.s32.totalorder %s113_s10, %s113_s10 }
  0x2b   :  { %v88_v8 = vadd.f32 %v70_v6, %v69_v4  ;;  %v98_v9 = vadd.f32 %v78_v7, %v77_v5  ;;  %p192_p4 = scmp.lt.s32.totalorder %s190_s14, %s186_s13 }
  0x2d   :  { %v89_v10 = vrot.slane %v88_v8, 4  ;;  %v99_v11 = vrot.slane %v98_v9, 4  ;;  %p193_p5 = por %p192_p4, %p191_p3 }
  0x2f   :  { %v90_v12 = vadd.f32 %v89_v10, %v88_v8  ;;  %v100_v13 = vadd.f32 %v99_v11, %v98_v9  ;;  %p194_p6 = pnand %p193_p5, %p187_p2 }
  0x31   :  { %v91_v14 = vrot.slane %v90_v12, 2  ;;  %v101_v15 = vrot.slane %v100_v13, 2 }
  0x33   :  { %v92_v16 = vadd.f32 %v91_v14, %v90_v12  ;;  %v102_v17 = vadd.f32 %v101_v15, %v100_v13 }
  0x35   :  { %v93_v18 = vrot.slane %v92_v16, 1  ;;  %v103_v19 = vrot.slane %v102_v17, 1 }
  0x37   :  { %v94_v20 = vadd.f32 %v93_v18, %v92_v16  ;;  %v104_v21 = vadd.f32 %v103_v19, %v102_v17 }
  0x39   :  { %95 = vst [vmem:[#allocation9] sm:$0x1] %v94_v20  ;;  %105 = vst [vmem:[#allocation10] sm:$0x1] %v104_v21 }
  0x3a   :  { %197 = shalt.err (!%p194_p6)
}
  0x3b   :  { %s198_s17 = scalar_lea.hbm %s322_s2, 16 }
  0x3c   :  { %p199_p7 = scmp.ne.s32.totalorder %s322_s2, %s198_s17  ;;  %p202_p8 = scmp.lt.u32.totalorder %s198_s17, %s322_s2 }
  0x3e   :  { %p204_p9 = pnand %p202_p8, %p199_p7 }
  0x40   :  { %207 = shalt.err (!%p204_p9)
}
  0x41   :  { %115 = dma.vmem_to_hbm [thread:$0]  %s113_s10, 16, %s322_s2, [#allocation6]  }
  0x42   :  { %s208_s24 = scalar_lea.vmem %s288_s12, 16  ;;  %s212_s25 = scalar_lea.vmem %s288_s12, 32 }
  0x43   :  { %p209_p10 = scmp.ne.s32.totalorder %s288_s12, %s208_s24  ;;  %p213_p11 = scmp.lt.s32.totalorder %s288_s12, %s288_s12 }
  0x44   :  { %p214_p12 = scmp.lt.s32.totalorder %s212_s25, %s208_s24 }
  0x46   :  { %p215_p13 = por %p214_p12, %p213_p11 }
  0x48   :  { %p216_p0 = pnand %p215_p13, %p209_p10 }
  0x4a   :  { %219 = shalt.err (!%p216_p0)
}
  0x4b   :  { %s220_s28 = scalar_lea.hbm %s323_s3, 16 }
  0x4c   :  { %p221_p1 = scmp.ne.s32.totalorder %s323_s3, %s220_s28  ;;  %p224_p2 = scmp.lt.u32.totalorder %s220_s28, %s323_s3 }
  0x4e   :  { %p226_p3 = pnand %p224_p2, %p221_p1 }
  0x50   :  { %229 = shalt.err (!%p226_p3)
}
  0x51   :  { %125 = dma.vmem_to_hbm [thread:$0]  %s288_s12, 16, %s323_s3, [#allocation11]  }
  0x52   :  { %234 = dma.done.wait [#allocation6], 16  }
  0x53   :  { %235 = vsyncadd [#allocation6], 4294967280 }
  0x54   :  { %236 = dma.done.wait [#allocation11], 16  }
  0x55   :  { %237 = vsyncadd [#allocation11], 4294967280 }
  0x56   :  { %132 = vsyncpa [#allocation5], 1 }
  0x57   :  { %133 = vsyncpa [#allocation8], 1 }
  0x58   :  { %134 = vsyncpa [#allocation6], 1 }
  0x59   :  { %135 = vsyncpa [#allocation11], 1 }

</bundles_post_ra>
